<compile_context>
chip_gen: v7x
topology: tpu7x:2x2x1
jax: 0.10.0
libtpu: 0.0.40
codegen_flags: <defaults>
</compile_context>

<pallas_src>
import jax
import jax.numpy as jnp
from jax.experimental import pallas as pl
from jax.experimental.pallas import tpu as pltpu


def _round_up(x, m):
    return ((x + m - 1) // m) * m


def label_attn_kernel(c_ref, w0t_ref, w1t_ref, lab_ref, out_ref, t0_ref):
    """One (batch-tile, label-tile) grid step.

    c_ref   : (N, TB, D)   chunk embeddings (chunk-major, batch tile, embd)
    w0t_ref : (D, H)       label_attn_linear_weights_0, pre-transposed
    w1t_ref : (H, TL)      label_attn_linear_weights_1, pre-transposed L-tile
    lab_ref : (D, TL)      label_embeddings L-tile
    out_ref : (TB, TL)     logits tile
    t0_ref  : (N*TB, H)    VMEM scratch: cached tanh(c @ w0^T)
    """
    n, tb, d = c_ref.shape
    tl = out_ref.shape[1]
    c_flat = c_ref[...].reshape(n * tb, d)      # leading-axis collapse only

    # t0 is independent of the label tile: compute it once per batch tile
    # (first step of the inner label axis) and cache it in VMEM scratch.
    @pl.when(pl.program_id(1) == 0)
    def _():
        t0 = jnp.tanh(jnp.dot(c_flat, w0t_ref[...],
                              preferred_element_type=jnp.float32))
        t0_ref[...] = t0.astype(t0_ref.dtype)

    # Three large MXU calls instead of 3*N tiny per-chunk matmuls.
    scores = jnp.dot(t0_ref[...], w1t_ref[...],
                     preferred_element_type=jnp.float32)       # (N*TB, TL)
    sims = jnp.dot(c_flat, lab_ref[...],
                   preferred_element_type=jnp.float32)         # (N*TB, TL)
    scores = scores.reshape(n, tb, tl)
    sims = sims.reshape(n, tb, tl)

    # Numerically-stable softmax over the chunk axis (the leading axis), so
    # it is pure elementwise VPU math — no cross-lane/sublane reductions.
    m = jnp.max(scores, axis=0, keepdims=True)
    e = jnp.exp(scores - m)
    denom = jnp.sum(e, axis=0)                                 # (TB, TL)
    acc = jnp.sum(e * sims, axis=0)                            # (TB, TL)

    # logits = sum_n softmax_n * (c_n @ label_emb).  Exact reciprocal: the
    # approx=True variant was what broke the numeric check.
    out_ref[...] = (acc * pl.reciprocal(denom)).astype(out_ref.dtype)


def plm_multilabel_attention(chunk_embeddings_nbd, w0, w1, label_emb, *,
                             batch_tile=None, label_tile=None,
                             operand_dtype=jnp.float32):
    """Label-attention block of PlmMultiLabelEncoder.

    chunk_embeddings_nbd : (N, B, D) chunk embeddings (chunk-major)
    w0                   : (H, D) label_attn_linear_weights_0
    w1                   : (L, H) label_attn_linear_weights_1
    label_emb            : (D, L) label_embeddings
    returns logits       : (B, L) float32

    At production sizes pass operand_dtype=jnp.bfloat16 (MXU-native operands,
    f32 accumulation kept via preferred_element_type).
    """
    N, B, D = chunk_embeddings_nbd.shape
    H = w0.shape[0]
    L = w1.shape[0]

    # Batch tile: sublane-aligned; 128 rows at production so N*TB >= 256 MXU
    # rows per matmul.  B is padded, so any batch size works (no assert).
    if batch_tile is None:
        batch_tile = min(_round_up(B, 8), 128)
    b_pad = _round_up(B, batch_tile)

    # Label tile: lane-aligned (multiple of 128) -> unmasked lane-dense output
    # stores; bounds weight/activation VMEM at large L and on v7x (64 MiB).
    if label_tile is None:
        label_tile = min(_round_up(L, 128), 512)
    l_pad = _round_up(L, label_tile)

    c = chunk_embeddings_nbd.astype(operand_dtype)
    if b_pad != B:
        c = jnp.pad(c, ((0, 0), (0, b_pad - B), (0, 0)))

    # Pre-transpose the weights once outside the kernel so every in-kernel
    # dot contracts lhs-minor x rhs-major (no in-kernel weight relayouts).
    w0t = jnp.asarray(w0).T.astype(operand_dtype)              # (D, H)
    w1t = jnp.asarray(w1).T.astype(operand_dtype)              # (H, L)
    lab = jnp.asarray(label_emb).astype(operand_dtype)         # (D, L)
    if l_pad != L:
        w1t = jnp.pad(w1t, ((0, 0), (0, l_pad - L)))
        lab = jnp.pad(lab, ((0, 0), (0, l_pad - L)))

    grid = (b_pad // batch_tile, l_pad // label_tile)

    out = pl.pallas_call(
        label_attn_kernel,
        out_shape=jax.ShapeDtypeStruct((b_pad, l_pad), jnp.float32),
        grid_spec=pltpu.PrefetchScalarGridSpec(
            num_scalar_prefetch=0,
            grid=grid,
            in_specs=[
                pl.BlockSpec((N, batch_tile, D), lambda b, l: (0, b, 0)),
                # Grid-constant index map -> never re-DMA'd.  On v7x
                # (64 MiB VMEM) add pipeline_mode=pl.Buffered(1) here to drop
                # its redundant second buffer.
                pl.BlockSpec((D, H), lambda b, l: (0, 0)),
                pl.BlockSpec((H, label_tile), lambda b, l: (0, l)),
                pl.BlockSpec((D, label_tile), lambda b, l: (0, l)),
            ],
            out_specs=pl.BlockSpec((batch_tile, label_tile),
                                   lambda b, l: (b, l)),
            scratch_shapes=[
                pltpu.VMEM((N * batch_tile, H), operand_dtype),
            ],
        ),
        compiler_params=pltpu.CompilerParams(
            # Batch axis is parallel (megacore / v7x 2-TC split); the label
            # axis carries the cached-t0 dependence, so it stays "arbitrary".
            dimension_semantics=("parallel", "arbitrary"),
            # Above the 16/32 MiB scoped defaults on v5e/v6e so bigger tiles
            # fit; under v7x's 64 MiB physical VMEM with headroom.
            vmem_limit_bytes=56 * 1024 * 1024,
        ),
    )(c, w0t, w1t, lab)

    return out[:B, :L]


def lm_stub_embeddings(token_ids, attn_masks, embed_table):
    """Deterministic stand-in for the pretrained LM (chunk-major output).

    Mimics `hidden_states[-1][:, -1, :]`: the embedding of each chunk's last
    token, scaled by the chunk's attention-mask density.  Emits (N, B, D)
    directly so the kernel gets chunk-major data with no extra HBM transpose.
    token_ids/attn_masks: (B, chunk_num, chunk_size) int32
    returns: (chunk_num, B, D) float32
    """
    last_tok = token_ids[:, :, -1].T                                 # (N, B)
    emb = embed_table[last_tok]                                      # (N, B, D)
    mask_frac = jnp.mean(attn_masks.astype(jnp.float32), axis=-1).T  # (N, B)
    return emb * mask_frac[..., None]


def reference_forward(chunk_nbd, w0, w1, label_emb):
    """Plain-JAX replica of the PyTorch label-attention block (verification)."""
    c = jnp.transpose(chunk_nbd, (1, 2, 0))               # (B, D, N), as torch
    t0 = jnp.tanh(jnp.einsum('hd,bdn->bhn', w0, c))
    t1 = jnp.einsum('lh,bhn->bln', w1, t0)
    attn = jax.nn.softmax(t1, axis=2)
    weighted = jnp.einsum('bdn,bln->bdl', c, attn)
    return jnp.sum(weighted * label_emb[None], axis=1)     # (B, L)


if __name__ == "__main__":
    # Small, module-consistent shapes.
    batch = 2
    chunk_num = 5
    chunk_size = 8
    lm_embd_dim = 32
    first_attn_hidden_dim = 64
    label_num = 16
    vocab = 50

    key = jax.random.PRNGKey(0)
    k_tok, k_mask, k_tab, k_w0, k_w1, k_lab = jax.random.split(key, 6)

    token_ids = jax.random.randint(
        k_tok, (batch, chunk_num, chunk_size), 0, vocab, dtype=jnp.int32)
    attn_masks = jax.random.randint(
        k_mask, (batch, chunk_num, chunk_size), 0, 2, dtype=jnp.int32)

    # Deterministic parameter init (torch.rand -> uniform [0, 1)).
    embed_table = jax.random.uniform(k_tab, (vocab, lm_embd_dim), jnp.float32)
    w0 = jax.random.uniform(
        k_w0, (first_attn_hidden_dim, lm_embd_dim), jnp.float32)
    w1 = jax.random.uniform(
        k_w1, (label_num, first_attn_hidden_dim), jnp.float32)
    label_emb = jax.random.uniform(
        k_lab, (lm_embd_dim, label_num), jnp.float32)

    # Glue: LM stub produces chunk-major (chunk_num, B, D) embeddings.
    chunk_embeddings = lm_stub_embeddings(token_ids, attn_masks, embed_table)

    logits = plm_multilabel_attention(chunk_embeddings, w0, w1, label_emb)
    logits = jax.block_until_ready(logits)

    ref = reference_forward(chunk_embeddings, w0, w1, label_emb)
    assert logits.shape == (batch, label_num)
    assert jnp.allclose(logits, ref, rtol=1e-3, atol=1e-3), (
        "max abs err = %s" % float(jnp.max(jnp.abs(logits - ref))))

    print("KERNEL_OK")
</pallas_src>

<mosaic_0001>
module attributes {stable_mosaic.version = 11 : i64} {
  func.func @label_attn_kernel(%arg0: i32, %arg1: i32, %arg2: memref<5x8x32xf32, #tpu.memory_space<vmem>>, %arg3: memref<32x64xf32, #tpu.memory_space<vmem>>, %arg4: memref<64x128xf32, #tpu.memory_space<vmem>>, %arg5: memref<32x128xf32, #tpu.memory_space<vmem>>, %arg6: memref<8x128xf32, #tpu.memory_space<vmem>>, %arg7: memref<40x64xf32, #tpu.memory_space<vmem>>) attributes {dimension_semantics = [#tpu.dimension_semantics<parallel>, #tpu.dimension_semantics<arbitrary>], iteration_bounds = array<i64: 1, 1>, scalar_prefetch = 0 : i64, scratch_operands = 1 : i64, tpu.core_type = #tpu.core_type<tc>, window_params = [{transform_indices = @transform_0, window_bounds = array<i64: 5, 8, 32>}, {pipeline_mode = #tpu.pipeline_mode<synchronous>, transform_indices = @transform_1, window_bounds = array<i64: 32, 64>}, {transform_indices = @transform_2, window_bounds = array<i64: 64, 128>}, {transform_indices = @transform_3, window_bounds = array<i64: 32, 128>}, {transform_indices = @transform_4, window_bounds = array<i64: 8, 128>}]} {
    %c0 = arith.constant 0 : index
    %c0_0 = arith.constant 0 : index
    %c0_1 = arith.constant 0 : index
    %0 = vector.load %arg2[%c0, %c0_0, %c0_1] : memref<5x8x32xf32, #tpu.memory_space<vmem>>, vector<5x8x32xf32>
    %1 = vector.shape_cast %0 : vector<5x8x32xf32> to vector<40x32xf32>
    %c0_i32 = arith.constant 0 : i32
    %2 = arith.cmpi eq, %arg1, %c0_i32 : i32
    %3 = arith.extui %2 : i1 to i32
    %c0_i32_2 = arith.constant 0 : i32
    %4 = arith.cmpi ne, %3, %c0_i32_2 : i32
    scf.if %4 {
      %c0_15 = arith.constant 0 : index
      %c0_16 = arith.constant 0 : index
      %23 = vector.load %arg3[%c0_15, %c0_16] : memref<32x64xf32, #tpu.memory_space<vmem>>, vector<32x64xf32>
      %cst_17 = arith.constant dense<0.000000e+00> : vector<40x64xf32>
      %24 = tpu.matmul %1, %23, %cst_17 {dimension_numbers = #tpu.dot_dimension_numbers<[1], [0], [0], [1], [0, 0, 1, 1], [], []>} : vector<40x32xf32>, vector<32x64xf32>, vector<40x64xf32> -> vector<40x64xf32>
      %25 = math.tanh %24 : vector<40x64xf32>
      %c0_18 = arith.constant 0 : index
      %c0_19 = arith.constant 0 : index
      %26 = vector.load %arg7[%c0_18, %c0_19] : memref<40x64xf32, #tpu.memory_space<vmem>>, vector<40x64xf32>
      tpu.vector_store %arg7[%c0_18, %c0_19], %25 {strides = array<i32>} : memref<40x64xf32, #tpu.memory_space<vmem>>, vector<40x64xf32>,
    } else {
    }
    %c0_3 = arith.constant 0 : index
    %c0_4 = arith.constant 0 : index
    %5 = vector.load %arg7[%c0_3, %c0_4] : memref<40x64xf32, #tpu.memory_space<vmem>>, vector<40x64xf32>
    %c0_5 = arith.constant 0 : index
    %c0_6 = arith.constant 0 : index
    %6 = vector.load %arg4[%c0_5, %c0_6] : memref<64x128xf32, #tpu.memory_space<vmem>>, vector<64x128xf32>
    %cst = arith.constant dense<0.000000e+00> : vector<40x128xf32>
    %7 = tpu.matmul %5, %6, %cst {dimension_numbers = #tpu.dot_dimension_numbers<[1], [0], [0], [1], [0, 0, 1, 1], [], []>} : vector<40x64xf32>, vector<64x128xf32>, vector<40x128xf32> -> vector<40x128xf32>
    %c0_7 = arith.constant 0 : index
    %c0_8 = arith.constant 0 : index
    %8 = vector.load %arg5[%c0_7, %c0_8] : memref<32x128xf32, #tpu.memory_space<vmem>>, vector<32x128xf32>
    %cst_9 = arith.constant dense<0.000000e+00> : vector<40x128xf32>
    %9 = tpu.matmul %1, %8, %cst_9 {dimension_numbers = #tpu.dot_dimension_numbers<[1], [0], [0], [1], [0, 0, 1, 1], [], []>} : vector<40x32xf32>, vector<32x128xf32>, vector<40x128xf32> -> vector<40x128xf32>
    %10 = vector.shape_cast %7 : vector<40x128xf32> to vector<5x8x128xf32>
    %11 = vector.shape_cast %9 : vector<40x128xf32> to vector<5x8x128xf32>
    %cst_10 = arith.constant dense<0xFF800000> : vector<8x128xf32>
    %12 = vector.multi_reduction <maximumf>, %10, %cst_10 [0] : vector<5x8x128xf32> to vector<8x128xf32>
    %13 = vector.shape_cast %12 : vector<8x128xf32> to vector<1x8x128xf32>
    %14 = vector.broadcast %13 : vector<1x8x128xf32> to vector<5x8x128xf32>
    %15 = arith.subf %10, %14 : vector<5x8x128xf32>
    %16 = math.exp %15 : vector<5x8x128xf32>
    %cst_11 = arith.constant dense<0.000000e+00> : vector<8x128xf32>
    %17 = vector.multi_reduction <add>, %16, %cst_11 [0] : vector<5x8x128xf32> to vector<8x128xf32>
    %18 = arith.mulf %16, %11 : vector<5x8x128xf32>
    %cst_12 = arith.constant dense<0.000000e+00> : vector<8x128xf32>
    %19 = vector.multi_reduction <add>, %18, %cst_12 [0] : vector<5x8x128xf32> to vector<8x128xf32>
    %20 = tpu.reciprocal %17 : vector<8x128xf32> -> vector<8x128xf32>
    %21 = arith.mulf %19, %20 : vector<8x128xf32>
    %c0_13 = arith.constant 0 : index
    %c0_14 = arith.constant 0 : index
    %22 = vector.load %arg6[%c0_13, %c0_14] : memref<8x128xf32, #tpu.memory_space<vmem>>, vector<8x128xf32>
    tpu.vector_store %arg6[%c0_13, %c0_14], %21 {strides = array<i32>} : memref<8x128xf32, #tpu.memory_space<vmem>>, vector<8x128xf32>,
    return
  }
  func.func @transform_0(%arg0: i32, %arg1: i32) -> (i32, i32, i32) {
    %c0_i32 = arith.constant 0 : i32
    %c0_i32_0 = arith.constant 0 : i32
    %c0_i32_1 = arith.constant 0 : i32
    return %c0_i32, %arg0, %c0_i32_0 : i32, i32, i32
  }
  func.func @transform_1(%arg0: i32, %arg1: i32) -> (i32, i32) {
    %c0_i32 = arith.constant 0 : i32
    %c0_i32_0 = arith.constant 0 : i32
    %c0_i32_1 = arith.constant 0 : i32
    return %c0_i32, %c0_i32_0 : i32, i32
  }
  func.func @transform_2(%arg0: i32, %arg1: i32) -> (i32, i32) {
    %c0_i32 = arith.constant 0 : i32
    %c0_i32_0 = arith.constant 0 : i32
    return %c0_i32, %arg1 : i32, i32
  }
  func.func @transform_3(%arg0: i32, %arg1: i32) -> (i32, i32) {
    %c0_i32 = arith.constant 0 : i32
    %c0_i32_0 = arith.constant 0 : i32
    return %c0_i32, %arg1 : i32, i32
  }
  func.func @transform_4(%arg0: i32, %arg1: i32) -> (i32, i32) {
    %c0_i32 = arith.constant 0 : i32
    return %arg0, %arg1 : i32, i32
  }
}

</mosaic_0001>

<bundles_post_ra>
// kernel: tpu_custom_call.1
= control target key start
LH: loop header
LB: loop body
LE: loop exit
PB: predicated region body
PF: predicated region fallthrough
CT: control target
= control target key end

     0   :  { %9 = vsyncpa [#allocation4], 0  ;;  %s956_s0 = inlined_call_operand.hbm [shape: f32[5,8,32], index: 0, kind: input, shape index: {}]   ;;  %s957_s1 = inlined_call_operand.hbm [shape: f32[32,64], index: 1, kind: input, shape index: {}]   ;;  %s958_s2 = inlined_call_operand.hbm [shape: f32[64,128], index: 2, kind: input, shape index: {}]   ;;  %s959_s3 = inlined_call_operand.hbm [shape: f32[32,128], index: 3, kind: input, shape index: {}]   ;;  %s960_s4 = inlined_call_operand.hbm [shape: f32[8,128], index: 4, kind: output, shape index: {}]  }
   0x1   :  { %10 = vsyncpa [#allocation7], 0 }
   0x2   :  { %11 = vsyncpa [#allocation10], 0 }
   0x3   :  { %12 = vsyncpa [#allocation5], 0  ;;  %s785_s15 = smov [#allocation6]   ;;  %s786_s17 = smov [#allocation3]  }
   0x4   :  { %s30_s16 = sshll.u32 %s785_s15, 4  ;;  %s18_s18 = sshll.u32 %s786_s17, 4  ;;  %s31_s16 = int_to_ptr.vmem [resolvable:$true] %s30_s16  ;;  %s820_s18 = int_to_ptr.vmem [resolvable:$true] %s18_s18 }
   0x5   :  { %s667_s21 = scalar_lea.hbm %s957_s1, 512 }
   0x6   :  { %p668_p0 = scmp.ne.s32.totalorder %s957_s1, %s667_s21  ;;  %p671_p1 = scmp.lt.u32.totalorder %s667_s21, %s957_s1 }
   0x8   :  { %p673_p2 = pnand %p671_p1, %p668_p0 }
   0xa   :  { %676 = shalt.err (!%p673_p2)
}
   0xb   :  { %s677_s26 = scalar_lea.vmem %s31_s16, 512  ;;  %p682_p4 = scmp.lt.s32.totalorder %s31_s16, %s31_s16 }
   0xc   :  { %p678_p3 = scmp.ne.s32.totalorder %s31_s16, %s677_s26  ;;  %p683_p5 = scmp.lt.s32.totalorder %s677_s26, %s677_s26 }
   0xe   :  { %p684_p6 = por %p683_p5, %p682_p4 }
  0x10   :  { %p685_p7 = pnand %p684_p6, %p678_p3 }
  0x12   :  { %688 = shalt.err (!%p685_p7)
}
  0x13   :  { %s787_s27 = smov 128   ;;  %s788_s28 = smov 8  }
  0x14   :  { %36 = dma.hbm_to_vmem [thread:$0]  %s957_s1, 512, %s31_s16, [#allocation7], %s787_s27, %s787_s27, %s788_s28  }
  0x15   :  { %s689_s7 = scalar_lea.hbm %s956_s0, 640 }
  0x16   :  { %p690_p8 = scmp.ne.s32.totalorder %s956_s0, %s689_s7  ;;  %p693_p9 = scmp.lt.u32.totalorder %s689_s7, %s956_s0 }
  0x18   :  { %p695_p10 = pnand %p693_p9, %p690_p8 }
  0x1a   :  { %698 = shalt.err (!%p695_p10)
}
  0x1b   :  { %s699_s12 = scalar_lea.vmem %s820_s18, 640  ;;  %p704_p12 = scmp.lt.s32.totalorder %s820_s18, %s820_s18 }
  0x1c   :  { %p700_p11 = scmp.ne.s32.totalorder %s820_s18, %s699_s12  ;;  %p705_p13 = scmp.lt.s32.totalorder %s699_s12, %s699_s12 }
  0x1e   :  { %p706_p0 = por %p705_p13, %p704_p12 }
  0x20   :  { %p707_p1 = pnand %p706_p0, %p700_p11 }
  0x22   :  { %710 = shalt.err (!%p707_p1)
}
  0x23   :  { %24 = dma.hbm_to_vmem [thread:$0]  %s956_s0, 640, %s820_s18, [#allocation4], %s787_s27, %s787_s27, %s788_s28  }
  0x24   :  { %s789_s14 = smov [#allocation8]   ;;  %s790_s16 = smov [#allocation9]  }
  0x25   :  { %s42_s15 = sshll.u32 %s789_s14, 4  ;;  %s54_s17 = sshll.u32 %s790_s16, 4  ;;  %s43_s15 = int_to_ptr.vmem [resolvable:$true] %s42_s15  ;;  %s857_s17 = int_to_ptr.vmem [resolvable:$true] %s54_s17 }
  0x26   :  { %s711_s21 = scalar_lea.hbm %s958_s2, 1024 }
  0x27   :  { %p712_p2 = scmp.ne.s32.totalorder %s958_s2, %s711_s21  ;;  %p715_p3 = scmp.lt.u32.totalorder %s711_s21, %s958_s2 }
  0x29   :  { %p717_p4 = pnand %p715_p3, %p712_p2 }
  0x2b   :  { %720 = shalt.err (!%p717_p4)
}
  0x2c   :  { %s721_s0 = scalar_lea.vmem %s43_s15, 1024  ;;  %p726_p6 = scmp.lt.s32.totalorder %s43_s15, %s43_s15 }
  0x2d   :  { %p722_p5 = scmp.ne.s32.totalorder %s43_s15, %s721_s0  ;;  %p727_p7 = scmp.lt.s32.totalorder %s721_s0, %s721_s0 }
  0x2f   :  { %p728_p8 = por %p727_p7, %p726_p6 }
  0x31   :  { %p729_p9 = pnand %p728_p8, %p722_p5 }
  0x33   :  { %732 = shalt.err (!%p729_p9)
}
  0x34   :  { %48 = dma.hbm_to_vmem [thread:$0]  %s958_s2, 1024, %s43_s15, [#allocation7], %s787_s27, %s787_s27, %s788_s28  }
  0x35   :  { %s733_s5 = scalar_lea.hbm %s959_s3, 512 }
  0x36   :  { %p734_p10 = scmp.ne.s32.totalorder %s959_s3, %s733_s5  ;;  %p737_p11 = scmp.lt.u32.totalorder %s733_s5, %s959_s3 }
  0x38   :  { %p739_p12 = pnand %p737_p11, %p734_p10 }
  0x3a   :  { %742 = shalt.err (!%p739_p12)
}
  0x3b   :  { %s743_s10 = scalar_lea.vmem %s857_s17, 512  ;;  %p748_p0 = scmp.lt.s32.totalorder %s857_s17, %s857_s17 }
  0x3c   :  { %p744_p13 = scmp.ne.s32.totalorder %s857_s17, %s743_s10  ;;  %p749_p1 = scmp.lt.s32.totalorder %s743_s10, %s743_s10 }
  0x3e   :  { %p750_p2 = por %p749_p1, %p748_p0 }
  0x40   :  { %p751_p3 = pnand %p750_p2, %p744_p13 }
  0x42   :  { %754 = shalt.err (!%p751_p3)
}
  0x43   :  { %60 = dma.hbm_to_vmem [thread:$0]  %s959_s3, 512, %s857_s17, [#allocation10], %s787_s27, %s787_s27, %s788_s28  }
  0x44   :  { %777 = dma.done.wait [#allocation4], 640  }
  0x45   :  { %778 = vsyncadd [#allocation4], 4294966656 }
  0x46   :  { %779 = dma.done.wait [#allocation7], 1536  }
  0x47   :  { %780 = vsyncadd [#allocation7], 4294965760 }
  0x48   :  { %781 = dma.done.wait [#allocation10], 512  }
  0x49   :  { %782 = vsyncadd [#allocation10], 4294966784  ;;  %v791_v0 = vmov 0.0|0.0   ;;  %vm792_vm0 = vmmov 0   ;;  %v793_v1 = vmov 0.0   ;;  %v82_v2 = vld [vmem:[#allocation6] sm:$0xff] }
  0x4a   :  { %607 = vmatprep.subr.bf16.mxu0 %v791_v0  ;;  %631 = vmatprep.subr.bf16.mxu1 %v791_v0  ;;  %v83_v3 = vld [vmem:[#allocation6 + $0x8] sm:$0xff]  ;;  %v84_v4 = vld [vmem:[#allocation6 + $0x10] sm:$0xff]  ;;  %v85_v6 = vld [vmem:[#allocation6 + $0x18] sm:$0xff]  ;;  %vm86_vm1 = vcmask 261120   ;;  %vm197_vm2 = vcmask 523264   ;;  %s794_s3 = smov [#allocation11]  }
  0x4b   :  { %538 = vmatprep.mubr.msk.f32.mxu0 %vm792_vm0, %v793_v1  ;;  %544 = vmatprep.mubr.msk.f32.mxu1 %vm792_vm0, %v793_v1  ;;  %v608_v5 = vpack.c.bf16 %v83_v3, %v82_v2  ;;  %v611_v7 = vpack.c.bf16 %v85_v6, %v84_v4  ;;  %v73_v8 = vld [vmem:[#allocation3] sm:$0xff]  ;;  %v75_v9 = vld [vmem:[#allocation3 + $0x10] sm:$0xff]  ;;  %v74_v10 = vld [vmem:[#allocation3 + $0x8] sm:$0xff]  ;;  %s473_s27 = sshll.u32 %s794_s3, 4  ;;  %s474_s27 = int_to_ptr.vmem [resolvable:$true] %s473_s27 }
  0x4c   :  { %v76_v11 = vld [vmem:[#allocation3 + $0x18] sm:$0xff]  ;;  %v77_v12 = vld [vmem:[#allocation3 + $0x20] sm:$0xff]  ;;  %v208_v13 = vld [vmem:[#allocation8] sm:$0xff]  ;;  %s755_s28 = scalar_lea.vmem %s474_s27, 128  ;;  %p760_p5 = scmp.lt.s32.totalorder %s474_s27, %s474_s27 }
  0x4d   :  { %609 = vmatpush3.bf16.msra.mxu0 %v608_v5  ;;  %633 = vmatpush3.bf16.msra.mxu1 %v608_v5  ;;  %v209_v14 = vld [vmem:[#allocation8 + $0x8] sm:$0xff]  ;;  %v210_v16 = vld [vmem:[#allocation8 + $0x10] sm:$0xff]  ;;  %v211_v17 = vld [vmem:[#allocation8 + $0x18] sm:$0xff]  ;;  %p756_p4 = scmp.ne.s32.totalorder %s474_s27, %s755_s28  ;;  %p761_p6 = scmp.lt.s32.totalorder %s755_s28, %s755_s28 }
  0x4e   :  { %610 = vmatprep.subr.bf16.mxu0 %v791_v0  ;;  %632 = vmatprep.subr.bf16.mxu1 %v791_v0  ;;  %v614_v15 = vpack.c.bf16 %v209_v14, %v208_v13  ;;  %v617_v18 = vpack.c.bf16 %v211_v17, %v210_v16  ;;  %v212_v19 = vld [vmem:[#allocation8 + $0x20] sm:$0xff]  ;;  %v213_v20 = vld [vmem:[#allocation8 + $0x28] sm:$0xff]  ;;  %v214_v22 = vld [vmem:[#allocation8 + $0x30] sm:$0xff] }
  0x4f   :  { %v620_v21 = vpack.c.bf16 %v213_v20, %v212_v19  ;;  %v215_v23 = vld [vmem:[#allocation8 + $0x38] sm:$0xff]  ;;  %v322_v25 = vld [vmem:[#allocation9] sm:$0xff]  ;;  %v323_v26 = vld [vmem:[#allocation9 + $0x8] sm:$0xff]  ;;  %p762_p7 = por %p761_p6, %p760_p5 }
  0x50   :  { %v623_v24 = vpack.c.bf16 %v215_v23, %v214_v22  ;;  %v626_v27 = vpack.c.bf16 %v323_v26, %v322_v25  ;;  %v324_v28 = vld [vmem:[#allocation9 + $0x10] sm:$0xff]  ;;  %v325_v29 = vld [vmem:[#allocation9 + $0x18] sm:$0xff] }
  0x51   :  { %612 = vmatpush3.bf16.msra.mxu0 %v611_v7  ;;  %634 = vmatpush3.bf16.msra.mxu1 %v611_v7  ;;  %v629_v30 = vpack.c.bf16 %v325_v29, %v324_v28  ;;  %p763_p8 = pnand %p762_p7, %p756_p4 }
  0x52   :  { %613 = vmatprep.subr.bf16.mxu1 %v791_v0  ;;  %625 = vmatprep.subr.bf16.mxu0 %v791_v0 }
  0x54   :  { %539 = vmatmul.mubr.msk.f32.vlgmr.msra.gmra.mrb[0].mxu0 %vm86_vm1, %v73_v8  ;;  %545 = vmatmul.mubr.msk.f32.vlgmr.msra.gmra.mrb[0].mxu1 %vm86_vm1, %v75_v9 }
  0x55   :  { %541 = vmatprep.mubr.msk.f32.mxu0 %vm792_vm0, %v793_v1  ;;  %547 = vmatprep.mubr.msk.f32.mxu1 %vm792_vm0, %v793_v1 }
  0x56   :  { %615 = vmatpush3.bf16.msra.mxu1 %v614_v15  ;;  %627 = vmatpush3.bf16.msra.mxu0 %v626_v27 }
  0x57   :  { %616 = vmatprep.subr.bf16.mxu1 %v791_v0  ;;  %628 = vmatprep.subr.bf16.mxu0 %v791_v0 }
  0x58   :  { %542 = vmatmul.mubr.msk.f32.gmra.mrb[2].mxu0 %vm86_vm1, %v74_v10  ;;  %548 = vmatmul.mubr.msk.f32.gmra.mrb[2].mxu1 %vm86_vm1, %v76_v11 }
  0x59   :  { %550 = vmatprep.mubr.msk.f32.mxu1 %vm792_vm0, %v793_v1  ;;  %592 = vmatprep.mubr.msk.f32.mxu0 %vm792_vm0, %v793_v1 }
  0x5a   :  { %618 = vmatpush3.bf16.msra.mxu1 %v617_v18  ;;  %630 = vmatpush3.bf16.msra.mxu0 %v629_v30 }
  0x5b   :  { %619 = vmatprep.subr.bf16.mxu1 %v791_v0 }
  0x5c   :  { %551 = vmatmul.mubr.msk.f32.gmra.mrb[4].mxu1 %vm86_vm1, %v77_v12 }
  0x5d   :  { %569 = vmatprep.mubr.msk.f32.mxu1 %vm792_vm0, %v793_v1  ;;  %593 = vmatmul.mubr.msk.f32.vlgmr.msra.gmra.mrb[4].mxu0 %vm86_vm1, %v73_v8 }
  0x5e   :  { %621 = vmatpush3.bf16.msra.mxu1 %v620_v21  ;;  %595 = vmatprep.mubr.msk.f32.mxu0 %vm792_vm0, %v793_v1 }
  0x5f   :  { %622 = vmatprep.subr.bf16.mxu1 %v791_v0 }
  0x61   :  { %596 = vmatmul.mubr.msk.f32.gmra.mrb[6].mxu0 %vm86_vm1, %v74_v10 }
  0x62   :  { %624 = vmatpush3.bf16.msra.mxu1 %v623_v24  ;;  %598 = vmatprep.mubr.msk.f32.mxu0 %vm792_vm0, %v793_v1 }
  0x65   :  { %599 = vmatmul.mubr.msk.f32.gmra.mrb[8].mxu0 %vm86_vm1, %v75_v9 }
  0x66   :  { %601 = vmatprep.mubr.msk.f32.mxu0 %vm792_vm0, %v793_v1 }
  0x69   :  { %602 = vmatmul.mubr.msk.f32.gmra.mrb[10].mxu0 %vm86_vm1, %v76_v11 }
  0x6a   :  { %604 = vmatprep.mubr.msk.f32.mxu0 %vm792_vm0, %v793_v1 }
  0x6d   :  { %605 = vmatmul.mubr.msk.f32.gmra.mrb[12].mxu0 %vm86_vm1, %v77_v12 }
 0x127   :  { %v168_v31 = vpop.f32.mrb[0].mxu0  ;;  %v178_v32 = vpop.f32.mrb[0].mxu1 }
 0x128   :  { %645 = vtanh.f32 %v168_v31  ;;  %v540_v33 = vpop.f32.mrb[1].mxu0  ;;  %v546_v34 = vpop.f32.mrb[1].mxu1 }
 0x129   :  { %647 = vtanh.f32 %v178_v32 }
 0x12b   :  { %v173_v35 = vpop.f32.mrb[2].mxu0  ;;  %v183_v36 = vpop.f32.mrb[2].mxu1 }
 0x12c   :  { %649 = vtanh.f32 %v173_v35  ;;  %v543_v37 = vpop.f32.mrb[3].mxu0  ;;  %v549_v38 = vpop.f32.mrb[3].mxu1 }
 0x12d   :  { %651 = vtanh.f32 %v183_v36 }
 0x12f   :  { %v188_v39 = vpop.f32.mrb[4].mxu1 }
 0x130   :  { %653 = vtanh.f32 %v188_v39  ;;  %v552_v40 = vpop.f32.mrb[5].mxu1  ;;  %v408_v51 = vpop.f32.mrb[4].mxu0 }
 0x131   :  { %v594_v52 = vpop.f32.mrb[5].mxu0 }
 0x132   :  { %v646_v41 = vpop.eup %645 }
 0x133   :  { %v648_v42 = vpop.eup %647  ;;  %198 = vst.msk [vmem:[#allocation2] sm:$0xff] %vm197_vm2, %v646_v41 }
 0x134   :  { %200 = vst.msk [vmem:[#allocation2 + $0x10] sm:$0xff] %vm197_vm2, %v648_v42  ;;  %v413_v53 = vpop.f32.mrb[6].mxu0 }
 0x135   :  { %v597_v54 = vpop.f32.mrb[7].mxu0 }
 0x136   :  { %v650_v43 = vpop.eup %649 }
 0x137   :  { %v652_v44 = vpop.eup %651  ;;  %199 = vst.msk [vmem:[#allocation2 + $0x8] sm:$0xff] %vm197_vm2, %v650_v43 }
 0x138   :  { %201 = vst.msk [vmem:[#allocation2 + $0x18] sm:$0xff] %vm197_vm2, %v652_v44  ;;  %v418_v55 = vpop.f32.mrb[8].mxu0 }
 0x139   :  { %v600_v56 = vpop.f32.mrb[9].mxu0 }
 0x13a   :  { %v654_v45 = vpop.eup %653  ;;  %v203_v46 = vld [vmem:[#allocation2] sm:$0xff] }
 0x13b   :  { %570 = vmatmul.mubr.msk.f32.vlgmr.msra.gmra.mrb[6].mxu1 %vm197_vm2, %v203_v46  ;;  %202 = vst.msk [vmem:[#allocation2 + $0x20] sm:$0xff] %vm197_vm2, %v654_v45  ;;  %v205_v48 = vld [vmem:[#allocation2 + $0x10] sm:$0xff] }
 0x13c   :  { %572 = vmatprep.mubr.msk.f32.mxu1 %vm792_vm0, %v793_v1  ;;  %v423_v57 = vpop.f32.mrb[10].mxu0 }
 0x13d   :  { %v603_v58 = vpop.f32.mrb[11].mxu0 }
 0x13e   :  { %v204_v47 = vld [vmem:[#allocation2 + $0x8] sm:$0xff] }
 0x13f   :  { %573 = vmatmul.mubr.msk.f32.gmra.mrb[8].mxu1 %vm197_vm2, %v204_v47  ;;  %v206_v49 = vld [vmem:[#allocation2 + $0x18] sm:$0xff] }
 0x140   :  { %575 = vmatprep.mubr.msk.f32.mxu1 %vm792_vm0, %v793_v1  ;;  %v428_v59 = vpop.f32.mrb[12].mxu0 }
 0x141   :  { %v606_v60 = vpop.f32.mrb[13].mxu0 }
 0x142   :  { %v207_v50 = vld [vmem:[#allocation2 + $0x20] sm:$0xff] }
 0x143   :  { %576 = vmatmul.mubr.msk.f32.gmra.mrb[10].mxu1 %vm197_vm2, %v205_v48 }
 0x144   :  { %578 = vmatprep.mubr.msk.f32.mxu1 %vm792_vm0, %v793_v1 }
 0x147   :  { %579 = vmatmul.mubr.msk.f32.gmra.mrb[12].mxu1 %vm197_vm2, %v206_v49 }
 0x148   :  { %581 = vmatprep.mubr.msk.f32.mxu1 %vm792_vm0, %v793_v1 }
 0x14b   :  { %582 = vmatmul.mubr.msk.f32.gmra.mrb[14].mxu1 %vm197_vm2, %v207_v50 }
 0x20e   :  { %v298_v61 = vpop.f32.mrb[6].mxu1 }
 0x20f   :  { %v571_v62 = vpop.f32.mrb[7].mxu1 }
 0x212   :  { %v303_v63 = vpop.f32.mrb[8].mxu1 }
 0x213   :  { %v574_v0 = vpop.f32.mrb[9].mxu1 }
 0x216   :  { %v308_v2 = vpop.f32.mrb[10].mxu1 }
 0x217   :  { %v577_v3 = vpop.f32.mrb[11].mxu1 }
 0x21a   :  { %v313_v1 = vpop.f32.mrb[12].mxu1 }
 0x21b   :  { %v434_v4 = vmax.f32 %v308_v2, %v313_v1  ;;  %v580_v5 = vpop.f32.mrb[13].mxu1 }
 0x21e   :  { %v318_v6 = vpop.f32.mrb[14].mxu1 }
 0x21f   :  { %v432_v7 = vmax.f32 %v298_v61, %v318_v6  ;;  %v583_v8 = vpop.f32.mrb[15].mxu1 }
 0x221   :  { %v433_v9 = vmax.f32 %v432_v7, %v303_v63 }
 0x223   :  { %v435_v10 = vmax.f32 %v433_v9, %v434_v4 }
 0x225   :  { %v440_v11 = vsub.f32 %v318_v6, %v435_v10  ;;  %v436_v12 = vsub.f32 %v298_v61, %v435_v10  ;;  %v437_v13 = vsub.f32 %v303_v63, %v435_v10  ;;  %v438_v14 = vsub.f32 %v308_v2, %v435_v10 }
 0x226   :  { %v439_v15 = vsub.f32 %v313_v1, %v435_v10 }
 0x227   :  { %v449_v16 = vmul.f32 1.442695, %v440_v11  ;;  %v441_v17 = vmul.f32 1.442695, %v436_v12  ;;  %v443_v18 = vmul.f32 1.442695, %v437_v13 }
 0x228   :  { %v445_v19 = vmul.f32 1.442695, %v438_v14  ;;  %v447_v20 = vmul.f32 1.442695, %v439_v15 }
 0x229   :  { %655 = vpow2.f32 %v449_v16 }
 0x22a   :  { %657 = vpow2.f32 %v441_v17 }
 0x22b   :  { %659 = vpow2.f32 %v443_v18 }
 0x22c   :  { %661 = vpow2.f32 %v445_v19 }
 0x22d   :  { %663 = vpow2.f32 %v447_v20 }
 0x233   :  { %v656_v21 = vpop.eup %655 }
 0x234   :  { %v658_v22 = vpop.eup %657  ;;  %v459_v23 = vmul.f32 %v656_v21, %v428_v59 }
 0x235   :  { %v660_v24 = vpop.eup %659  ;;  %v455_v25 = vmul.f32 %v658_v22, %v408_v51 }
 0x236   :  { %v662_v26 = vpop.eup %661  ;;  %v456_v27 = vmul.f32 %v660_v24, %v413_v53  ;;  %v451_v28 = vadd.f32 %v660_v24, %v658_v22 }
 0x237   :  { %v664_v29 = vpop.eup %663  ;;  %v457_v30 = vmul.f32 %v662_v26, %v418_v55 }
 0x238   :  { %v460_v31 = vadd.f32 %v456_v27, %v455_v25  ;;  %v458_v32 = vmul.f32 %v664_v29, %v423_v57  ;;  %v452_v33 = vadd.f32 %v662_v26, %v451_v28 }
 0x23a   :  { %v461_v34 = vadd.f32 %v460_v31, %v457_v30  ;;  %v453_v35 = vadd.f32 %v664_v29, %v452_v33 }
 0x23c   :  { %v462_v36 = vadd.f32 %v461_v34, %v458_v32  ;;  %v454_v37 = vadd.f32 %v656_v21, %v453_v35 }
 0x23e   :  { %v463_v38 = vadd.f32 %v462_v36, %v459_v23  ;;  %665 = vrcp.f32 %v454_v37 }
 0x248   :  { %v666_v39 = vpop.eup %665 }
 0x249   :  { %v465_v40 = vmul.f32 %v666_v39, %v463_v38 }
 0x24b   :  { %466 = vst [vmem:[#allocation11] sm:$0xff] %v465_v40 }
 0x24c   :  { %766 = shalt.err (!%p763_p8)
}
 0x24d   :  { %s767_s13 = scalar_lea.hbm %s960_s4, 128 }
 0x24e   :  { %p768_p9 = scmp.ne.s32.totalorder %s960_s4, %s767_s13  ;;  %p771_p10 = scmp.lt.u32.totalorder %s767_s13, %s960_s4 }
 0x250   :  { %p773_p11 = pnand %p771_p10, %p768_p9 }
 0x252   :  { %776 = shalt.err (!%p773_p11)
}
 0x253   :  { %476 = dma.vmem_to_hbm [thread:$0]  %s474_s27, 128, %s960_s4, [#allocation5]  }
 0x254   :  { %783 = dma.done.wait [#allocation5], 128  }
 0x255   :  { %784 = vsyncadd [#allocation5], 4294967168 }
 0x256   :  { %480 = vsyncpa [#allocation4], 1 }
 0x257   :  { %481 = vsyncpa [#allocation7], 1 }
 0x258   :  { %482 = vsyncpa [#allocation10], 1 }
 0x259   :  { %483 = vsyncpa [#allocation5], 1 }

</bundles_post_ra>
